<compile_context>
chip_gen: v5e
topology: v5e:2x2
jax: 0.10.0
libtpu: 0.0.40
codegen_flags: <defaults>
</compile_context>

<pallas_src>
import functools

import jax
import jax.numpy as jnp
from jax import lax
from jax.experimental import pallas as pl
from jax.experimental.pallas import tpu as pltpu

# ----------------------------- config (static hyperparams) -------------------
HIDDEN = 32            # trunk.config.hidden_size
NUM_LABELS = 1         # task_num_labels
NORMALIZATION = True   # self.normalization
TARGET_MEAN = 0.5      # registered buffer `mean`
TARGET_STD = 2.0       # registered buffer `std`
EPS = 1e-12            # torch.nn.functional.normalize eps

_VMEM_LIMIT = 48 * 1024 * 1024   # explicit cap; safe on v7x (64 MiB physical)


def _round_up(x, m):
    return ((x + m - 1) // m) * m


# ----------------------------- kernels ---------------------------------------
def _residue_head_kernel(h_ref, g_ref, w1_ref, b1_ref, w2t_ref, b2_ref, out_ref):
    """Residue head on a tile of packed rows.

    h_ref:   (TR, PH)   bf16  P = PH//H original rows packed into 128 lanes
    g_ref:   (PH, PH)   f32   block-diag of ones -> per-group sum of squares
    w1_ref:  (PH, PH)   bf16  block_diag(w1 x P)
    b1_ref:  (1, PH)    f32   tile(b1, P)
    w2t_ref: (P*NL, PH) bf16  block_diag((w2*std).T x P)
    b2_ref:  (P*NL, 1)  f32   tile(b2*std+mean, P)
    out_ref: (1, P*NL, TR) f32  lane-dense along TR
    """
    x = h_ref[...].astype(jnp.float32)                                  # (TR, PH)
    # per-32-lane-group sum of squares via one MXU matmul (f32 for a tight norm)
    ss = jnp.dot(x * x, g_ref[...], preferred_element_type=jnp.float32)
    x = x / jnp.maximum(jnp.sqrt(ss), EPS)
    # classifier: Linear -> ReLU -> Linear, bf16 MXU operands, f32 accumulation
    xb = x.astype(jnp.bfloat16)
    z = jnp.dot(xb, w1_ref[...], preferred_element_type=jnp.float32) + b1_ref[...]
    z = jnp.maximum(z, 0.0)
    # second linear computed transposed -> lane-dense (P*NL, TR) output tile
    p = lax.dot_general(w2t_ref[...], z.astype(jnp.bfloat16),
                        dimension_numbers=(((1,), (1,)), ((), ())),
                        preferred_element_type=jnp.float32)             # (P*NL, TR)
    out_ref[...] = (p + b2_ref[...])[None].astype(out_ref.dtype)


def _protein_head_kernel(h_ref, m_ref, w1_ref, b1_ref, w2t_ref, b2_ref,
                         out_ref, acc_ref, cnt_ref):
    """Masked mean pool over L (accumulated across grid axis 1), then classifier."""
    l = pl.program_id(1)

    @pl.when(l == 0)
    def _():
        acc_ref[...] = jnp.zeros_like(acc_ref)
        cnt_ref[...] = jnp.zeros_like(cnt_ref)

    m3 = m_ref[...]                                                     # (BT,1,LT) bf16
    # masked sum over L on the MXU: bf16 inputs, f32 accumulation
    s = lax.dot_general(m3, h_ref[...],
                        dimension_numbers=(((2,), (1,)), ((0,), (0,))),
                        preferred_element_type=jnp.float32)             # (BT,1,H)
    acc_ref[...] += s[:, 0, :]
    cnt_ref[...] += jnp.sum(m3.astype(jnp.float32), axis=2)             # (BT,1)

    @pl.when(l == pl.num_programs(1) - 1)
    def _():
        # guard 0/0 for an all-masked sequence (PyTorch reference would be NaN;
        # this divergence is intentional).
        pooled = acc_ref[...] / jnp.maximum(cnt_ref[...], 1.0)          # (BT,H)
        nrm = jnp.sqrt(jnp.sum(pooled * pooled, axis=-1, keepdims=True))
        x = (pooled / jnp.maximum(nrm, EPS)).astype(jnp.bfloat16)
        z = jnp.dot(x, w1_ref[...], preferred_element_type=jnp.float32) + b1_ref[...]
        z = jnp.maximum(z, 0.0)
        p = lax.dot_general(z.astype(jnp.bfloat16), w2t_ref[...],
                            dimension_numbers=(((1,), (1,)), ((), ())),
                            preferred_element_type=jnp.float32)         # (BT,NL)
        out_ref[...] = (p + b2_ref[...]).astype(out_ref.dtype)


# ----------------------------- wrappers ---------------------------------------
def _fold_output_norm(w2, b2):
    """Fold `pred * std + mean` into the second linear layer's weights/bias."""
    if NORMALIZATION:
        w2 = w2 * TARGET_STD
        b2 = b2 * TARGET_STD + TARGET_MEAN
    return w2, b2


@functools.partial(jax.jit, static_argnames=("row_tile",))
def residue_prediction(h, w1, b1, w2, b2, *, row_tile=8192):
    """h: (B, L, H) -> (B, L, NUM_LABELS)   (task_output_type == 'residue')."""
    B, L, H = h.shape
    NL = w2.shape[-1]
    rows = B * L
    # pack P rows of H features into the 128 lanes (H=32 -> P=4)
    P = 128 // H if (H <= 128 and 128 % H == 0) else 1
    PH = P * H

    rows_packed = pl.cdiv(rows, P)
    # biggest tile that fits VMEM, but keep >= 2 tiles when possible so the
    # "parallel" axis can shard across v7x's two TensorCores; keep the
    # second-last block dim a multiple of 8 (sublane rule).
    row_tile = max(8, min(row_tile, _round_up(pl.cdiv(rows_packed, 2), 8)))
    n_tiles = pl.cdiv(rows_packed, row_tile)
    rows_packed_pad = n_tiles * row_tile
    rows_pad = rows_packed_pad * P

    # explicit zero padding (do not rely on unspecified OOB reads for last tile)
    h2 = h.reshape(rows, H).astype(jnp.bfloat16)
    if rows_pad != rows:
        h2 = jnp.pad(h2, ((0, rows_pad - rows), (0, 0)))
    hp = h2.reshape(rows_packed_pad, PH)

    # fold de-normalization into w2/b2; build block-diagonal packed weights
    w2f, b2f = _fold_output_norm(w2, b2)
    eye_p = jnp.eye(P, dtype=jnp.float32)
    g_blk = jnp.kron(eye_p, jnp.ones((H, H), jnp.float32))              # (PH,PH)
    w1_blk = jnp.kron(eye_p, w1).astype(jnp.bfloat16)                    # (PH,PH)
    b1_blk = jnp.tile(b1.reshape(1, H), (1, P))                          # (1,PH)
    w2t_blk = jnp.kron(eye_p, w2f.reshape(H, NL).T).astype(jnp.bfloat16)  # (P*NL,PH)
    b2_blk = jnp.tile(b2f.reshape(NL, 1), (P, 1))                        # (P*NL,1)

    flops = rows_packed_pad * (4 * PH * PH + 2 * PH * P * NL)
    bytes_accessed = (rows_packed_pad * PH * 2 + rows_packed_pad * P * NL * 4
                      + 3 * PH * PH * 4)
    cost = pl.CostEstimate(flops=int(flops),
                           transcendentals=int(rows_packed_pad * PH),
                           bytes_accessed=int(bytes_accessed))

    out = pl.pallas_call(
        _residue_head_kernel,
        out_shape=jax.ShapeDtypeStruct((n_tiles, P * NL, row_tile), jnp.float32),
        grid_spec=pltpu.PrefetchScalarGridSpec(
            num_scalar_prefetch=0,
            grid=(n_tiles,),
            in_specs=[
                pl.BlockSpec((row_tile, PH), lambda i: (i, 0)),
                pl.BlockSpec((PH, PH), lambda i: (0, 0)),
                pl.BlockSpec((PH, PH), lambda i: (0, 0)),
                pl.BlockSpec((1, PH), lambda i: (0, 0)),
                pl.BlockSpec((P * NL, PH), lambda i: (0, 0)),
                pl.BlockSpec((P * NL, 1), lambda i: (0, 0)),
            ],
            out_specs=pl.BlockSpec((1, P * NL, row_tile), lambda i: (i, 0, 0)),
        ),
        compiler_params=pltpu.CompilerParams(
            dimension_semantics=("parallel",),
            vmem_limit_bytes=_VMEM_LIMIT),
        cost_estimate=cost,
    )(hp, g_blk, w1_blk, b1_blk, w2t_blk, b2_blk)

    # (n_tiles, P*NL, TR) -> (rows_pad, NL) -> drop padding -> (B, L, NL)
    out = out.transpose(0, 2, 1).reshape(rows_pad, NL)[:rows]
    return out.reshape(B, L, NL)


@functools.partial(jax.jit, static_argnames=("b_tile", "l_tile"))
def protein_prediction(h, residue_mask, w1, b1, w2, b2, *, b_tile=16, l_tile=2048):
    """h: (B, L, H), residue_mask: (B, L) -> (B, NUM_LABELS)  ('protein')."""
    # TODO(synk): obtain_real_residue_mask needs tokenizer special-token info;
    # the attention mask is used as the real-residue mask here.
    B, L, H = h.shape
    NL = w2.shape[-1]
    w2f, b2f = _fold_output_norm(w2, b2)
    w2t = w2f.reshape(H, NL).T.astype(jnp.bfloat16)   # (NL, H)
    b2r = b2f.reshape(1, NL)
    w1b = w1.astype(jnp.bfloat16)
    b1r = b1.reshape(1, H)

    # Tiles must divide evenly (padded garbage would corrupt the accumulation);
    # l_tile is the mask block's lane dim, so it must be a multiple of 128 or L.
    b_tile = b_tile if (B % b_tile == 0) else B
    l_tile = l_tile if (L % l_tile == 0 and l_tile % 128 == 0) else L

    m3 = residue_mask.reshape(B, 1, L).astype(jnp.bfloat16)

    flops = 2 * B * L * H + B * (2 * H * H + 2 * H * NL)
    bytes_accessed = B * L * H * 2 + B * L * 2 + B * NL * 4 + 2 * H * H
    cost = pl.CostEstimate(flops=int(flops), transcendentals=int(B * H),
                           bytes_accessed=int(bytes_accessed))

    return pl.pallas_call(
        _protein_head_kernel,
        out_shape=jax.ShapeDtypeStruct((B, NL), jnp.float32),
        grid_spec=pltpu.PrefetchScalarGridSpec(
            num_scalar_prefetch=0,
            grid=(B // b_tile, L // l_tile),
            in_specs=[
                pl.BlockSpec((b_tile, l_tile, H), lambda b, l: (b, l, 0)),
                pl.BlockSpec((b_tile, 1, l_tile), lambda b, l: (b, 0, l)),
                pl.BlockSpec((H, H), lambda b, l: (0, 0)),
                pl.BlockSpec((1, H), lambda b, l: (0, 0)),
                pl.BlockSpec((NL, H), lambda b, l: (0, 0)),
                pl.BlockSpec((1, NL), lambda b, l: (0, 0)),
            ],
            out_specs=pl.BlockSpec((b_tile, NL), lambda b, l: (b, 0)),
            scratch_shapes=[
                pltpu.VMEM((b_tile, H), jnp.float32),   # running sum(h * m)
                pltpu.VMEM((b_tile, 1), jnp.float32),   # running sum(m)
            ],
        ),
        compiler_params=pltpu.CompilerParams(
            dimension_semantics=("parallel", "arbitrary"),
            vmem_limit_bytes=_VMEM_LIMIT),
        cost_estimate=cost,
    )(h.astype(jnp.bfloat16), m3, w1b, b1r, w2t, b2r)


# ----------------------------- plain-JAX reference (for checking) ------------
def _ref_head(x, w1, b1, w2, b2):
    x = x / jnp.maximum(jnp.sqrt(jnp.sum(x * x, axis=-1, keepdims=True)), EPS)
    z = jax.nn.relu(x @ w1 + b1)
    p = z @ w2 + b2
    return p * TARGET_STD + TARGET_MEAN if NORMALIZATION else p


# ----------------------------- main -------------------------------------------
if __name__ == "__main__":
    key = jax.random.PRNGKey(0)
    k_emb, k_w1, k_b1, k_w2, k_b2, k_ids = jax.random.split(key, 6)

    B, L, H = 2, 8, HIDDEN
    VOCAB = 24

    # Synthetic inputs consistent with the module's forward signature.
    input_ids = jax.random.randint(k_ids, (B, L), 0, VOCAB)
    attention_mask = jnp.ones((B, L), dtype=jnp.int32).at[1, 6:].set(0)

    # Deterministic stand-in for trunk hidden states (glue, not the kernel).
    embed_table = jax.random.normal(k_emb, (VOCAB, H), dtype=jnp.float32)
    h = embed_table[input_ids] * attention_mask[:, :, None]             # (B, L, H)
    # Ship hidden states in bf16 (heads are HBM-read bound); kernels accumulate f32.
    h_bf16 = h.astype(jnp.bfloat16)
    h_f32 = h_bf16.astype(jnp.float32)                                  # reference

    # Classifier parameters (nn.Linear-style uniform init, deterministic).
    bound1 = 1.0 / (H ** 0.5)
    w1 = jax.random.uniform(k_w1, (H, H), jnp.float32, -bound1, bound1)
    b1 = jax.random.uniform(k_b1, (1, H), jnp.float32, -bound1, bound1)
    w2 = jax.random.uniform(k_w2, (H, NUM_LABELS), jnp.float32, -bound1, bound1)
    b2 = jax.random.uniform(k_b2, (1, NUM_LABELS), jnp.float32, -bound1, bound1)

    # Residue-level predictions: (B, L, NUM_LABELS)
    pred_res = jax.block_until_ready(residue_prediction(h_bf16, w1, b1, w2, b2))
    ref_res = _ref_head(h_f32, w1, b1, w2, b2)
    assert pred_res.shape == (B, L, NUM_LABELS)
    # bf16 MXU operands (f32 accumulation) -> compare at bf16-appropriate tolerance
    assert jnp.allclose(pred_res, ref_res, atol=2e-2, rtol=2e-2), (
        float(jnp.max(jnp.abs(pred_res - ref_res))))

    # Protein-level predictions: (B, NUM_LABELS)
    pred_prot = jax.block_until_ready(
        protein_prediction(h_bf16, attention_mask, w1, b1, w2, b2))
    m = attention_mask.astype(jnp.float32)[:, :, None]
    pooled = (h_f32 * m).sum(axis=1) / m.sum(axis=1)
    ref_prot = _ref_head(pooled, w1, b1, w2, b2)
    assert pred_prot.shape == (B, NUM_LABELS)
    assert jnp.allclose(pred_prot, ref_prot, atol=2e-2, rtol=2e-2), (
        float(jnp.max(jnp.abs(pred_prot - ref_prot))))

    print("KERNEL_OK")
</pallas_src>

<mosaic_0001>
module attributes {stable_mosaic.version = 11 : i64} {
  func.func @_residue_head_kernel(%arg0: i32, %arg1: memref<8x128xbf16, #tpu.memory_space<vmem>>, %arg2: memref<128x128xf32, #tpu.memory_space<vmem>>, %arg3: memref<128x128xbf16, #tpu.memory_space<vmem>>, %arg4: memref<1x128xf32, #tpu.memory_space<vmem>>, %arg5: memref<4x128xbf16, #tpu.memory_space<vmem>>, %arg6: memref<4x1xf32, #tpu.memory_space<vmem>>, %arg7: memref<1x4x8xf32, #tpu.memory_space<vmem>>) attributes {dimension_semantics = [#tpu.dimension_semantics<parallel>], iteration_bounds = array<i64: 1>, scalar_prefetch = 0 : i64, scratch_operands = 0 : i64, tpu.core_type = #tpu.core_type<tc>, window_params = [{transform_indices = @transform_0, window_bounds = array<i64: 8, 128>}, {pipeline_mode = #tpu.pipeline_mode<synchronous>, transform_indices = @transform_1, window_bounds = array<i64: 128, 128>}, {pipeline_mode = #tpu.pipeline_mode<synchronous>, transform_indices = @transform_2, window_bounds = array<i64: 128, 128>}, {pipeline_mode = #tpu.pipeline_mode<synchronous>, transform_indices = @transform_3, window_bounds = array<i64: 1, 128>}, {pipeline_mode = #tpu.pipeline_mode<synchronous>, transform_indices = @transform_4, window_bounds = array<i64: 4, 128>}, {pipeline_mode = #tpu.pipeline_mode<synchronous>, transform_indices = @transform_5, window_bounds = array<i64: 4, 1>}, {transform_indices = @transform_6, window_bounds = array<i64: 1, 4, 8>}]} {
    %c0 = arith.constant 0 : index
    %c0_0 = arith.constant 0 : index
    %0 = vector.load %arg1[%c0, %c0_0] : memref<8x128xbf16, #tpu.memory_space<vmem>>, vector<8x128xbf16>
    %1 = arith.extf %0 : vector<8x128xbf16> to vector<8x128xf32>
    %2 = arith.mulf %1, %1 : vector<8x128xf32>
    %c0_1 = arith.constant 0 : index
    %c0_2 = arith.constant 0 : index
    %3 = vector.load %arg2[%c0_1, %c0_2] : memref<128x128xf32, #tpu.memory_space<vmem>>, vector<128x128xf32>
    %cst = arith.constant dense<0.000000e+00> : vector<8x128xf32>
    %4 = tpu.matmul %2, %3, %cst {dimension_numbers = #tpu.dot_dimension_numbers<[1], [0], [0], [1], [0, 0, 1, 1], [], []>} : vector<8x128xf32>, vector<128x128xf32>, vector<8x128xf32> -> vector<8x128xf32>
    %5 = math.sqrt %4 : vector<8x128xf32>
    %cst_3 = arith.constant 9.99999996E-13 : f32
    %6 = vector.broadcast %cst_3 : f32 to vector<8x128xf32>
    %7 = arith.maximumf %5, %6 : vector<8x128xf32>
    %8 = arith.divf %1, %7 : vector<8x128xf32>
    %9 = arith.truncf %8 : vector<8x128xf32> to vector<8x128xbf16>
    %c0_4 = arith.constant 0 : index
    %c0_5 = arith.constant 0 : index
    %10 = vector.load %arg3[%c0_4, %c0_5] : memref<128x128xbf16, #tpu.memory_space<vmem>>, vector<128x128xbf16>
    %cst_6 = arith.constant dense<0.000000e+00> : vector<8x128xf32>
    %11 = tpu.matmul %9, %10, %cst_6 {dimension_numbers = #tpu.dot_dimension_numbers<[1], [0], [0], [1], [0, 0, 1, 1], [], []>} : vector<8x128xbf16>, vector<128x128xbf16>, vector<8x128xf32> -> vector<8x128xf32>
    %c0_7 = arith.constant 0 : index
    %c0_8 = arith.constant 0 : index
    %12 = vector.load %arg4[%c0_7, %c0_8] : memref<1x128xf32, #tpu.memory_space<vmem>>, vector<1x128xf32>
    %13 = vector.broadcast %12 : vector<1x128xf32> to vector<8x128xf32>
    %14 = arith.addf %11, %13 : vector<8x128xf32>
    %cst_9 = arith.constant 0.000000e+00 : f32
    %15 = vector.broadcast %cst_9 : f32 to vector<8x128xf32>
    %16 = arith.maximumf %14, %15 : vector<8x128xf32>
    %c0_10 = arith.constant 0 : index
    %c0_11 = arith.constant 0 : index
    %17 = vector.load %arg5[%c0_10, %c0_11] : memref<4x128xbf16, #tpu.memory_space<vmem>>, vector<4x128xbf16>
    %18 = arith.truncf %16 : vector<8x128xf32> to vector<8x128xbf16>
    %cst_12 = arith.constant dense<0.000000e+00> : vector<4x8xf32>
    %19 = tpu.matmul %17, %18, %cst_12 {dimension_numbers = #tpu.dot_dimension_numbers<[1], [1], [0], [0], [0, 0, 1, 0], [], []>} : vector<4x128xbf16>, vector<8x128xbf16>, vector<4x8xf32> -> vector<4x8xf32>
    %c0_13 = arith.constant 0 : index
    %c0_14 = arith.constant 0 : index
    %20 = vector.load %arg6[%c0_13, %c0_14] : memref<4x1xf32, #tpu.memory_space<vmem>>, vector<4x1xf32>
    %21 = vector.broadcast %20 : vector<4x1xf32> to vector<4x8xf32>
    %22 = arith.addf %19, %21 : vector<4x8xf32>
    %23 = vector.shape_cast %22 : vector<4x8xf32> to vector<1x4x8xf32>
    %c0_15 = arith.constant 0 : index
    %c0_16 = arith.constant 0 : index
    %c0_17 = arith.constant 0 : index
    %24 = vector.load %arg7[%c0_15, %c0_16, %c0_17] : memref<1x4x8xf32, #tpu.memory_space<vmem>>, vector<1x4x8xf32>
    tpu.vector_store %arg7[%c0_15, %c0_16, %c0_17], %23 {strides = array<i32>} : memref<1x4x8xf32, #tpu.memory_space<vmem>>, vector<1x4x8xf32>,
    return
  }
  func.func @transform_0(%arg0: i32) -> (i32, i32) {
    %c0_i32 = arith.constant 0 : i32
    %c0_i32_0 = arith.constant 0 : i32
    return %arg0, %c0_i32 : i32, i32
  }
  func.func @transform_1(%arg0: i32) -> (i32, i32) {
    %c0_i32 = arith.constant 0 : i32
    %c0_i32_0 = arith.constant 0 : i32
    %c0_i32_1 = arith.constant 0 : i32
    return %c0_i32, %c0_i32_0 : i32, i32
  }
  func.func @transform_2(%arg0: i32) -> (i32, i32) {
    %c0_i32 = arith.constant 0 : i32
    %c0_i32_0 = arith.constant 0 : i32
    %c0_i32_1 = arith.constant 0 : i32
    return %c0_i32, %c0_i32_0 : i32, i32
  }
  func.func @transform_3(%arg0: i32) -> (i32, i32) {
    %c0_i32 = arith.constant 0 : i32
    %c0_i32_0 = arith.constant 0 : i32
    %c0_i32_1 = arith.constant 0 : i32
    return %c0_i32, %c0_i32_0 : i32, i32
  }
  func.func @transform_4(%arg0: i32) -> (i32, i32) {
    %c0_i32 = arith.constant 0 : i32
    %c0_i32_0 = arith.constant 0 : i32
    %c0_i32_1 = arith.constant 0 : i32
    return %c0_i32, %c0_i32_0 : i32, i32
  }
  func.func @transform_5(%arg0: i32) -> (i32, i32) {
    %c0_i32 = arith.constant 0 : i32
    %c0_i32_0 = arith.constant 0 : i32
    %c0_i32_1 = arith.constant 0 : i32
    return %c0_i32, %c0_i32_0 : i32, i32
  }
  func.func @transform_6(%arg0: i32) -> (i32, i32, i32) {
    %c0_i32 = arith.constant 0 : i32
    %c0_i32_0 = arith.constant 0 : i32
    %c0_i32_1 = arith.constant 0 : i32
    return %arg0, %c0_i32, %c0_i32_0 : i32, i32, i32
  }
}

</mosaic_0001>

<bundles_post_ra>
// kernel: residue_prediction.1
= control target key start
LH: loop header
LB: loop body
LE: loop exit
PB: predicated region body
PF: predicated region fallthrough
CT: control target
= control target key end

     0   :  { %v248_v52 = vmov 0   ;;  %vm195_vm6 = vcmask 60416   ;;  %s371_s1 = inlined_call_operand.vmem [shape: f32[128,128], index: 1, kind: input, shape index: {}]   ;;  %s372_s0 = inlined_call_operand.vmem [shape: bf16[8,128], index: 0, kind: input, shape index: {}]   ;;  %s373_s3 = inlined_call_operand.vmem [shape: f32[1,128], index: 3, kind: input, shape index: {}]   ;;  %s374_s2 = inlined_call_operand.vmem [shape: bf16[128,128], index: 2, kind: input, shape index: {}]   ;;  %s375_s5 = inlined_call_operand.vmem [shape: f32[4,1], index: 5, kind: input, shape index: {}]   ;;  %s376_s4 = inlined_call_operand.vmem [shape: bf16[4,128], index: 4, kind: input, shape index: {}]   ;;  %s377_s6 = inlined_call_operand.vmem [shape: f32[1,4,8], index: 6, kind: output, shape index: {}]  }
   0x1   :  { %v42_v0 = vld [vmem:[%s371_s1 + $0x78] sm:$0xff]  ;;  %v41_v1 = vld [vmem:[%s371_s1 + $0x70] sm:$0xff]  ;;  %v40_v2 = vld [vmem:[%s371_s1 + $0x68] sm:$0xff]  ;;  %242 = vset.pattern.permute.xlu0 %v248_v52 }
   0x2   :  { %43 = vmatpush.msra.mxu0 %v42_v0  ;;  %v39_v3 = vld [vmem:[%s371_s1 + $0x60] sm:$0xff]  ;;  %v38_v4 = vld [vmem:[%s371_s1 + $0x58] sm:$0xff]  ;;  %v37_v5 = vld [vmem:[%s371_s1 + $0x50] sm:$0xff] }
   0x3   :  { %v36_v6 = vld [vmem:[%s371_s1 + $0x48] sm:$0xff]  ;;  %v35_v7 = vld [vmem:[%s371_s1 + $0x40] sm:$0xff]  ;;  %v34_v8 = vld [vmem:[%s371_s1 + $0x38] sm:$0xff] }
   0x4   :  { %44 = vmatpush.msra.mxu0 %v41_v1  ;;  %v33_v9 = vld [vmem:[%s371_s1 + $0x30] sm:$0xff]  ;;  %v32_v10 = vld [vmem:[%s371_s1 + $0x28] sm:$0xff]  ;;  %v31_v11 = vld [vmem:[%s371_s1 + $0x20] sm:$0xff] }
   0x5   :  { %v24_v12 = vld [vmem:[%s372_s0] sm:$0xf]  ;;  %v30_v13 = vld [vmem:[%s371_s1 + $0x18] sm:$0xff]  ;;  %v29_v14 = vld [vmem:[%s371_s1 + $0x10] sm:$0xff] }
   0x6   :  { %45 = vmatpush.msra.mxu0 %v40_v2  ;;  %v25_v15 = vunpack.c.l.bf16 %v24_v12  ;;  %v28_v16 = vld [vmem:[%s371_s1 + $0x8] sm:$0xff]  ;;  %v27_v17 = vld [vmem:[%s371_s1] sm:$0xff]  ;;  %v240_v19 = vld [vmem:[%s374_s2 + $0x38] sm:$0xff] }
   0x7   :  { %160 = vmatpush.bf16.msra.mxu1 %v240_v19  ;;  %v239_v20 = vld [vmem:[%s374_s2 + $0x30] sm:$0xff]  ;;  %v238_v21 = vld [vmem:[%s374_s2 + $0x28] sm:$0xff]  ;;  %v237_v22 = vld [vmem:[%s374_s2 + $0x20] sm:$0xff] }
   0x8   :  { %46 = vmatpush.msra.mxu0 %v39_v3  ;;  %v26_v18 = vmul.f32 %v25_v15, %v25_v15  ;;  %v236_v23 = vld [vmem:[%s374_s2 + $0x18] sm:$0xff]  ;;  %v235_v24 = vld [vmem:[%s374_s2 + $0x10] sm:$0xff]  ;;  %v234_v26 = vld [vmem:[%s374_s2 + $0x8] sm:$0xff] }
   0x9   :  { %v233_v27 = vld [vmem:[%s374_s2] sm:$0xff] }
   0xa   :  { %47 = vmatpush.msra.mxu0 %v38_v4  ;;  %v176_v51 = vld [vmem:[%s375_s5] sm:$0xf] }
   0xb   :  { %161 = vmatpush.bf16.msra.mxu1 %v239_v20  ;;  %179 = vperm.xlu0 %242, %v176_v51   ;;  %v243_v53 = vld [vmem:[%s373_s3] ss:$0 sm:$0xff] }
   0xc   :  { %48 = vmatpush.msra.mxu0 %v37_v5  ;;  %v174_v59 = vld [vmem:[%s376_s4] sm:$0x3] }
   0xe   :  { %49 = vmatpush.msra.mxu0 %v36_v6 }
   0xf   :  { %162 = vmatpush.bf16.msra.mxu1 %v238_v21 }
  0x10   :  { %50 = vmatpush.msra.mxu0 %v35_v7 }
  0x12   :  { %51 = vmatpush.msra.mxu0 %v34_v8 }
  0x13   :  { %163 = vmatpush.bf16.msra.mxu1 %v237_v22 }
  0x14   :  { %52 = vmatpush.msra.mxu0 %v33_v9 }
  0x16   :  { %53 = vmatpush.msra.mxu0 %v32_v10 }
  0x17   :  { %164 = vmatpush.bf16.msra.mxu1 %v236_v23 }
  0x18   :  { %54 = vmatpush.msra.mxu0 %v31_v11 }
  0x1a   :  { %55 = vmatpush.msra.mxu0 %v30_v13 }
  0x1b   :  { %165 = vmatpush.bf16.msra.mxu1 %v235_v24 }
  0x1c   :  { %56 = vmatpush.msra.mxu0 %v29_v14 }
  0x1e   :  { %57 = vmatpush.msra.mxu0 %v28_v16 }
  0x1f   :  { %166 = vmatpush.bf16.msra.mxu1 %v234_v26 }
  0x20   :  { %58 = vmatpush.msra.mxu0 %v27_v17 }
  0x21   :  { %59 = vmatmul.f32.vlgmr.msra.gmra.mxu0 %v26_v18 }
  0x23   :  { %167 = vmatpush.bf16.msra.mxu1 %v233_v27 }
  0x7d   :  { %v180_v60 = vpop.permute.xlu0 %179 }
  0x9e   :  { %v60_v25 = vpop.f32.mrf.mxu0 }
  0x9f   :  { %244 = vrsqrt.f32 %v60_v25  ;;  %vm70_vm0 = vcmp.eq.f32.partialorder %v60_v25, inf  ;;  %v73_v35 = vand.u32 2147483648, %v60_v25  ;;  %vm72_vm1 = vcmp.eq.f32.partialorder %v60_v25, 0.0 }
  0xa5   :  { %v245_v28 = vpop.eup %244 }
  0xa6   :  { %v64_v29 = vmul.f32 %v245_v28, %v60_v25 }
  0xa8   :  { %v65_v30 = vmul.f32 %v245_v28, %v64_v29 }
  0xaa   :  { %v66_v31 = vmul.f32 0.5, %v65_v30 }
  0xac   :  { %v67_v32 = vsub.f32 1.5, %v66_v31 }
  0xae   :  { %v68_v33 = vmul.f32 %v245_v28, %v67_v32 }
  0xb0   :  { %v69_v34 = vmul.f32 %v68_v33, %v60_v25 }
  0xb2   :  { %v71_v36 = vsel %vm70_vm0, %v60_v25, %v69_v34 }
  0xb3   :  { %v74_v37 = vsel %vm72_vm1, %v73_v35, %v71_v36 }
  0xb4   :  { %v75_v38 = vmax.f32 %v74_v37, 1e-12 }
  0xb6   :  { %246 = vrcp.f32 %v75_v38  ;;  %v87_v42 = vand.u32 2147483648, %v75_v38  ;;  %v85_v44 = vand.u32 2147483647, %v75_v38  ;;  %vm81_vm3 = vweird.f32 %v75_v38 }
  0xb8   :  { %v88_v46 = vor.u32 1.1754944e-38, %v87_v42  ;;  %vm86_vm5 = vcmp.eq.f32.partialorder %v85_v44, 8.507059e+37 }
  0xbc   :  { %v247_v39 = vpop.eup %246 }
  0xbd   :  { %v77_v40 = vmul.f32 %v247_v39, %v75_v38  ;;  %vm82_vm2 = vweird.f32 %v247_v39 }
  0xbe   :  { %vm83_vm4 = vmor %vm81_vm3, %vm82_vm2 }
  0xbf   :  { %v78_v41 = vsub.f32 1.0, %v77_v40 }
  0xc1   :  { %v79_v43 = vmul.f32 %v247_v39, %v78_v41 }
  0xc3   :  { %v80_v45 = vadd.f32 %v247_v39, %v79_v43 }
  0xc5   :  { %v84_v47 = vsel %vm83_vm4, %v247_v39, %v80_v45 }
  0xc6   :  { %v89_v48 = vsel %vm86_vm5, %v88_v46, %v84_v47 }
  0xc7   :  { %v90_v49 = vmul.f32 %v89_v48, %v25_v15 }
  0xc9   :  { %v91_v50 = vpack.c.bf16 %v90_v49, %v90_v49 }
  0xcb   :  { %168 = vmatmul.bf16.vlgmr.msra.gmra.mxu1 %v91_v50 }
 0x148   :  { %v169_v54 = vpop.f32.mrf.mxu1 }
 0x149   :  { %v170_v55 = vadd.f32 %v243_v53, %v169_v54 }
 0x14b   :  { %v173_v56 = vmax.f32 %v170_v55, 0.0 }
 0x14d   :  { %v175_v57 = vpack.c.bf16 %v173_v56, %v173_v56 }
 0x14f   :  { %189 = vmatpush.bf16.xpose.msra.mxu2 %v175_v57 }
 0x150   :  { %v171_v58 = vpop.f32.mrf.mxu1 }
 0x156   :  { %190 = vmatmul.bf16.vlgmr.msra.gmra.mxu2 %v174_v59 }
 0x1d9   :  { %v191_v61 = vpop.f32.mrf.mxu2 }
 0x1da   :  { %v192_v62 = vadd.f32 %v191_v61, %v180_v60 }
 0x1dc   :  { %196 = vst.msk [vmem:[%s377_s6] sm:$0xf] %vm195_vm6, %v192_v62 }
 0x1e1   :  { %v193_v63 = vpop.f32.mrf.mxu2 }

</bundles_post_ra>
